<compile_context>
chip_gen: v7x
topology: tpu7x:2x2x1
jax: 0.10.0
libtpu: 0.0.40
codegen_flags: <defaults>
</compile_context>

<pallas_src>
import functools
import math

import jax
import jax.numpy as jnp
from jax.experimental import pallas as pl
from jax.experimental.pallas import tpu as pltpu

F32_EPS = float(jnp.finfo(jnp.float32).eps)  # torch rms_norm default eps (f32 math)


# --------------------------------------------------------------------------- #
# Kernel
# --------------------------------------------------------------------------- #
def _dit_head_kernel(x_ref, mean_ref, scale_ref, wl_ref, o_ref, y_ref, *,
                     inv_scale, t_per_row, row_chunk, approx_sigmoid):
    tm = y_ref.shape[0]

    # y = rms_norm(x)*(scale+1)+mean is computed only once per row tile
    # (vocab axis j == program_id(2) is the innermost, sequential axis).
    @pl.when(pl.program_id(2) == 0)
    def _():
        def compute_chunk(r0, rc):
            x = x_ref[0, pl.ds(r0, rc), :].astype(jnp.float32)          # [rc, D]
            if t_per_row:
                mean = mean_ref[0, pl.ds(r0, rc), :].astype(jnp.float32)
                scale = scale_ref[0, pl.ds(r0, rc), :].astype(jnp.float32)
            else:
                mean = mean_ref[0].astype(jnp.float32)                  # [1, D]
                scale = scale_ref[0].astype(jnp.float32)
            ms = jnp.mean(x * x, axis=-1, keepdims=True)
            xn = x * jax.lax.rsqrt(ms + F32_EPS)
            y = xn * (scale + 1.0) + mean
            y_ref[pl.ds(r0, rc), :] = y.astype(y_ref.dtype)

        n_chunks = tm // row_chunk
        if n_chunks <= 1:
            compute_chunk(0, tm)
        else:
            # Chunked to bound vreg pressure at large tm (whole x tile + xn + y
            # would otherwise be live at once).
            def body(c, carry):
                r0 = pl.multiple_of(c * row_chunk, row_chunk)
                compute_chunk(r0, row_chunk)
                return carry
            jax.lax.fori_loop(0, n_chunks, body, 0, unroll=True)

    # Final projection for this vocab tile: [tm, D] @ [D, tn] on the MXU.
    logits = jnp.dot(y_ref[...], wl_ref[...], preferred_element_type=jnp.float32)

    # 30 * sigmoid(logits / (7.5*sqrt(D))); divide folded into a mul, exp on
    # the EUP, reciprocal optionally on the EUP approx path.
    z = logits * inv_scale
    sig = pl.reciprocal(1.0 + jnp.exp(-z), approx=approx_sigmoid)
    o_ref[0] = (30.0 * sig).astype(o_ref.dtype)


# --------------------------------------------------------------------------- #
# Tile / VMEM sizing helpers
# --------------------------------------------------------------------------- #
def _physical_vmem_bytes():
    try:
        info = pltpu.get_tpu_info()
        return int(getattr(info, "vmem_capacity_bytes"))
    except Exception:
        return 64 << 20  # conservative (v7x)


def _largest_tile(total, target, unit):
    """Largest t <= min(target, total) with total % t == 0 and (t % unit == 0 or t == total)."""
    t = min(target, total)
    if total % t == 0 and (t % unit == 0 or t == total):
        return t
    t = (t // unit) * unit
    while t >= unit:
        if total % t == 0:
            return t
        t -= unit
    return total


def _row_chunk(tm, target=256):
    if tm <= target:
        return tm
    for rc in range(target, 7, -8):
        if tm % rc == 0:
            return rc
    return tm


def _vmem_footprint(tm, tn, D, tp_blk, x_bytes, w_bytes, o_bytes, y_bytes, wl_bufs=2):
    return (2 * tm * D * x_bytes            # x tile, double-buffered
            + 2 * 2 * tp_blk * D * 4        # mean + scale (f32), double-buffered
            + wl_bufs * D * tn * w_bytes    # vocab weight tile
            + 2 * tm * tn * o_bytes         # output tile, double-buffered
            + tm * D * y_bytes)             # y scratch (single)


# --------------------------------------------------------------------------- #
# Wrapper
# --------------------------------------------------------------------------- #
def dit_head_forward(x, t, wt_T, wl_T, *, tm=None, tn=None, out_dtype=None,
                     approx_sigmoid=False, wl_buffers=2, vmem_limit_bytes=None):
    """x: [B, T, D], t: [B, 1|T, D], wt_T: [D, 2D], wl_T: [D, V] -> [B, T, V].

    For production, pass bf16 x / wl_T (full-rate MXU, half the weight DMA,
    bf16 output stream).
    """
    B, T, D = x.shape
    V = wl_T.shape[1]
    Tt = t.shape[1]
    assert Tt in (1, T), "t must be [B, 1, D] or [B, T, D]"
    if out_dtype is None:
        out_dtype = x.dtype

    # Tiny t_proj done once in XLA; split into mean/scale here so the kernel
    # never slices lanes out of a 2D-wide tile.
    tp = jnp.einsum('bsd,de->bse', t.astype(jnp.float32),
                    wt_T.astype(jnp.float32))          # [B, Tt, 2D], small, f32
    mean = tp[..., :D]
    scale = tp[..., D:]

    x_bytes = jnp.dtype(x.dtype).itemsize
    w_bytes = jnp.dtype(wl_T.dtype).itemsize
    o_bytes = jnp.dtype(out_dtype).itemsize
    y_bytes = w_bytes  # y scratch follows wl_T dtype -> full-rate MXU for bf16

    # Per-generation budget: 128 MiB VMEM (v5e/v6e) -> big tm target (v6e needs
    # ~650 rows to hide the wl DMA); 64 MiB (v7x) -> ~512 rows, smaller budget.
    vmem_phys = _physical_vmem_bytes()
    big_vmem = vmem_phys >= (100 << 20)
    budget = (80 << 20) if big_vmem else (44 << 20)
    tm_target = 1024 if big_vmem else 512

    # tn only needs to be lane-dense (multiple of 128) and MXU-wide; give the
    # rest of the VMEM budget to tm (restream traffic scales with 1/tm).
    if tn is None:
        tn = next((c for c in (512, 256, 128) if V % c == 0), V)
        tn = min(tn, V)
    if tm is None:
        tm = _largest_tile(T, tm_target, 8)
        tp_blk0 = 1 if Tt == 1 else tm
        while (tm > 8 and (tm // 2) % 8 == 0 and T % (tm // 2) == 0 and
               _vmem_footprint(tm, tn, D, tp_blk0, x_bytes, w_bytes, o_bytes,
                               y_bytes, wl_buffers) > budget):
            tm //= 2
            tp_blk0 = 1 if Tt == 1 else tm
    assert T % tm == 0 and V % tn == 0, (
        "T must be divisible by tm and V by tn (pad inputs or pass tm/tn).")

    tp_blk = 1 if Tt == 1 else tm
    t_per_row = Tt != 1
    tp_index = (lambda b, i, j: (b, 0, 0)) if Tt == 1 else (lambda b, i, j: (b, i, 0))

    footprint = _vmem_footprint(tm, tn, D, tp_blk, x_bytes, w_bytes, o_bytes,
                                y_bytes, wl_buffers)
    if vmem_limit_bytes is None:
        vmem_limit_bytes = int(min(max(footprint + (8 << 20), 32 << 20),
                                   max(vmem_phys - (8 << 20), 32 << 20)))

    inv_scale = 1.0 / (7.5 * math.sqrt(D))
    kernel = functools.partial(_dit_head_kernel,
                               inv_scale=inv_scale,
                               t_per_row=t_per_row,
                               row_chunk=_row_chunk(tm),
                               approx_sigmoid=approx_sigmoid)

    # Optionally deepen only the wl_T pipeline (v7x, if wl DMA is still exposed).
    if wl_buffers > 2:
        wl_spec = pl.BlockSpec((D, tn), lambda b, i, j: (0, j),
                               pipeline_mode=pl.Buffered(wl_buffers))
    else:
        wl_spec = pl.BlockSpec((D, tn), lambda b, i, j: (0, j))

    # NOTE(v7x): if a profile shows both TCs stalled on the wl stream even at
    # this tm, flip the megacore split to the vocab axis instead.
    out = pl.pallas_call(
        kernel,
        out_shape=jax.ShapeDtypeStruct((B, T, V), out_dtype),
        grid_spec=pltpu.PrefetchScalarGridSpec(
            num_scalar_prefetch=0,
            grid=(B, T // tm, V // tn),
            in_specs=[
                pl.BlockSpec((1, tm, D), lambda b, i, j: (b, i, 0)),   # x rows
                pl.BlockSpec((1, tp_blk, D), tp_index),                # mean
                pl.BlockSpec((1, tp_blk, D), tp_index),                # scale
                wl_spec,                                               # vocab tile
            ],
            out_specs=pl.BlockSpec((1, tm, tn), lambda b, i, j: (b, i, j)),
            scratch_shapes=[pltpu.VMEM((tm, D), wl_T.dtype)],          # y cache
        ),
        compiler_params=pltpu.CompilerParams(
            dimension_semantics=("parallel", "parallel", "arbitrary"),
            vmem_limit_bytes=vmem_limit_bytes),
    )(x, mean, scale, wl_T)
    return out


# --------------------------------------------------------------------------- #
# Reference + init (matches the PyTorch module)
# --------------------------------------------------------------------------- #
def _casted_linear_init(key, in_features, out_features):
    """CastedLinear.reset_parameters: U(-bound, bound), bound = sqrt(3)*0.5/sqrt(in)."""
    std = 0.5 * in_features ** (-0.5)
    bound = math.sqrt(3.0) * std
    # stored transposed: [in, out]
    return jax.random.uniform(key, (in_features, out_features),
                              minval=-bound, maxval=bound, dtype=jnp.float32)


def _reference(x, t, wt_T, wl_T):
    tp = jnp.einsum('btd,de->bte', jnp.broadcast_to(t, x.shape), wt_T)
    D = x.shape[-1]
    mean, scale = tp[..., :D], tp[..., D:]
    xn = x * jax.lax.rsqrt(jnp.mean(x * x, axis=-1, keepdims=True) + F32_EPS)
    y = xn * (scale + 1.0) + mean
    logits = jnp.einsum('btd,dv->btv', y, wl_T)
    return 30.0 * jax.nn.sigmoid(logits / (7.5 * math.sqrt(D)))


if __name__ == "__main__":
    B, T, D = 2, 8, 32
    vocab_size = 128  # already padded to 128 lanes

    key = jax.random.PRNGKey(0)
    kx, kt, kw1, kw2 = jax.random.split(key, 4)

    x = jax.random.normal(kx, (B, T, D), dtype=jnp.float32)
    t = jax.random.normal(kt, (B, 1, D), dtype=jnp.float32)  # broadcast over T

    wt_T = _casted_linear_init(kw1, D, 2 * D)        # t_proj: dim -> 2*dim
    wl_T = _casted_linear_init(kw2, D, vocab_size)   # linear: dim -> vocab

    # f32 path: bitwise-comparable to the reference at tight tolerance.
    out = jax.block_until_ready(dit_head_forward(x, t, wt_T, wl_T))
    ref = _reference(x, t, wt_T, wl_T)
    assert out.shape == (B, T, vocab_size)
    assert out.dtype == jnp.float32
    assert jnp.allclose(out, ref, atol=1e-5, rtol=1e-5), float(jnp.max(jnp.abs(out - ref)))

    # Production-style bf16 streams (bf16 x / wl_T / output): loose tolerance,
    # values lie in [0, 30] so bf16 rounding alone is ~0.1 absolute.
    out_bf = jax.block_until_ready(
        dit_head_forward(x.astype(jnp.bfloat16), t.astype(jnp.bfloat16),
                         wt_T, wl_T.astype(jnp.bfloat16)))
    assert out_bf.dtype == jnp.bfloat16
    assert jnp.allclose(out_bf.astype(jnp.float32), ref, atol=0.5), \
        float(jnp.max(jnp.abs(out_bf.astype(jnp.float32) - ref)))

    print("KERNEL_OK")
</pallas_src>

<mosaic_0001>
module attributes {stable_mosaic.version = 11 : i64} {
  func.func @_dit_head_kernel(%arg0: i32, %arg1: i32, %arg2: i32, %arg3: memref<1x8x32xf32, #tpu.memory_space<vmem>>, %arg4: memref<1x1x32xf32, #tpu.memory_space<vmem>>, %arg5: memref<1x1x32xf32, #tpu.memory_space<vmem>>, %arg6: memref<32x128xf32, #tpu.memory_space<vmem>>, %arg7: memref<1x8x128xf32, #tpu.memory_space<vmem>>, %arg8: memref<8x32xf32, #tpu.memory_space<vmem>>) attributes {dimension_semantics = [#tpu.dimension_semantics<parallel>, #tpu.dimension_semantics<parallel>, #tpu.dimension_semantics<arbitrary>], iteration_bounds = array<i64: 2, 1, 1>, scalar_prefetch = 0 : i64, scratch_operands = 1 : i64, tpu.core_type = #tpu.core_type<tc>, window_params = [{transform_indices = @transform_0, window_bounds = array<i64: 1, 8, 32>}, {transform_indices = @transform_1, window_bounds = array<i64: 1, 1, 32>}, {transform_indices = @transform_2, window_bounds = array<i64: 1, 1, 32>}, {transform_indices = @transform_3, window_bounds = array<i64: 32, 128>}, {transform_indices = @transform_4, window_bounds = array<i64: 1, 8, 128>}]} {
    %c0_i32 = arith.constant 0 : i32
    %0 = arith.cmpi eq, %arg2, %c0_i32 : i32
    %1 = arith.extui %0 : i1 to i32
    %c0_i32_0 = arith.constant 0 : i32
    %2 = arith.cmpi ne, %1, %c0_i32_0 : i32
    scf.if %2 {
      %c0_11 = arith.constant 0 : index
      %c0_12 = arith.constant 0 : index
      %c0_13 = arith.constant 0 : index
      %19 = vector.load %arg3[%c0_11, %c0_12, %c0_13] : memref<1x8x32xf32, #tpu.memory_space<vmem>>, vector<1x8x32xf32>
      %20 = vector.shape_cast %19 : vector<1x8x32xf32> to vector<8x32xf32>
      %c0_14 = arith.constant 0 : index
      %c0_15 = arith.constant 0 : index
      %c0_16 = arith.constant 0 : index
      %21 = vector.load %arg4[%c0_14, %c0_15, %c0_16] : memref<1x1x32xf32, #tpu.memory_space<vmem>>, vector<1x1x32xf32>
      %22 = vector.shape_cast %21 : vector<1x1x32xf32> to vector<1x32xf32>
      %c0_17 = arith.constant 0 : index
      %c0_18 = arith.constant 0 : index
      %c0_19 = arith.constant 0 : index
      %23 = vector.load %arg5[%c0_17, %c0_18, %c0_19] : memref<1x1x32xf32, #tpu.memory_space<vmem>>, vector<1x1x32xf32>
      %24 = vector.shape_cast %23 : vector<1x1x32xf32> to vector<1x32xf32>
      %25 = arith.mulf %20, %20 : vector<8x32xf32>
      %cst_20 = arith.constant dense<0.000000e+00> : vector<8xf32>
      %26 = vector.multi_reduction <add>, %25, %cst_20 [1] : vector<8x32xf32> to vector<8xf32>
      %27 = vector.shape_cast %26 : vector<8xf32> to vector<8x1xf32>
      %cst_21 = arith.constant 3.200000e+01 : f32
      %28 = vector.broadcast %cst_21 : f32 to vector<8x1xf32>
      %29 = arith.divf %27, %28 : vector<8x1xf32>
      %cst_22 = arith.constant 1.1920929E-7 : f32
      %30 = vector.broadcast %cst_22 : f32 to vector<8x1xf32>
      %31 = arith.addf %29, %30 : vector<8x1xf32>
      %32 = math.rsqrt %31 : vector<8x1xf32>
      %33 = vector.broadcast %32 : vector<8x1xf32> to vector<8x32xf32>
      %34 = arith.mulf %20, %33 : vector<8x32xf32>
      %cst_23 = arith.constant 1.000000e+00 : f32
      %35 = vector.broadcast %cst_23 : f32 to vector<1x32xf32>
      %36 = arith.addf %24, %35 : vector<1x32xf32>
      %37 = vector.broadcast %36 : vector<1x32xf32> to vector<8x32xf32>
      %38 = arith.mulf %34, %37 : vector<8x32xf32>
      %39 = vector.broadcast %22 : vector<1x32xf32> to vector<8x32xf32>
      %40 = arith.addf %38, %39 : vector<8x32xf32>
      %c0_24 = arith.constant 0 : index
      %c0_25 = arith.constant 0 : index
      %41 = vector.load %arg8[%c0_24, %c0_25] : memref<8x32xf32, #tpu.memory_space<vmem>>, vector<8x32xf32>
      tpu.vector_store %arg8[%c0_24, %c0_25], %40 {strides = array<i32>} : memref<8x32xf32, #tpu.memory_space<vmem>>, vector<8x32xf32>,
    } else {
    }
    %c0 = arith.constant 0 : index
    %c0_1 = arith.constant 0 : index
    %3 = vector.load %arg8[%c0, %c0_1] : memref<8x32xf32, #tpu.memory_space<vmem>>, vector<8x32xf32>
    %c0_2 = arith.constant 0 : index
    %c0_3 = arith.constant 0 : index
    %4 = vector.load %arg6[%c0_2, %c0_3] : memref<32x128xf32, #tpu.memory_space<vmem>>, vector<32x128xf32>
    %cst = arith.constant dense<0.000000e+00> : vector<8x128xf32>
    %5 = tpu.matmul %3, %4, %cst {dimension_numbers = #tpu.dot_dimension_numbers<[1], [0], [0], [1], [0, 0, 1, 1], [], []>} : vector<8x32xf32>, vector<32x128xf32>, vector<8x128xf32> -> vector<8x128xf32>
    %cst_4 = arith.constant 0.0235702265 : f32
    %6 = vector.broadcast %cst_4 : f32 to vector<8x128xf32>
    %7 = arith.mulf %5, %6 : vector<8x128xf32>
    %cst_5 = arith.constant 0.000000e+00 : f32
    %8 = vector.broadcast %cst_5 : f32 to vector<8x128xf32>
    %9 = arith.subf %8, %7 : vector<8x128xf32>
    %10 = math.exp %9 : vector<8x128xf32>
    %cst_6 = arith.constant 1.000000e+00 : f32
    %11 = vector.broadcast %cst_6 : f32 to vector<8x128xf32>
    %12 = arith.addf %11, %10 : vector<8x128xf32>
    %13 = tpu.reciprocal %12 : vector<8x128xf32> -> vector<8x128xf32>
    %cst_7 = arith.constant 3.000000e+01 : f32
    %14 = vector.broadcast %cst_7 : f32 to vector<8x128xf32>
    %15 = arith.mulf %14, %13 : vector<8x128xf32>
    %c0_8 = arith.constant 0 : index
    %c0_9 = arith.constant 0 : index
    %c0_10 = arith.constant 0 : index
    %16 = vector.load %arg7[%c0_8, %c0_9, %c0_10] : memref<1x8x128xf32, #tpu.memory_space<vmem>>, vector<1x8x128xf32>
    %17 = vector.shape_cast %16 : vector<1x8x128xf32> to vector<8x128xf32>
    %18 = vector.shape_cast %15 : vector<8x128xf32> to vector<1x8x128xf32>
    tpu.vector_store %arg7[%c0_8, %c0_9, %c0_10], %18 {strides = array<i32>} : memref<1x8x128xf32, #tpu.memory_space<vmem>>, vector<1x8x128xf32>,
    return
  }
  func.func @transform_0(%arg0: i32, %arg1: i32, %arg2: i32) -> (i32, i32, i32) {
    %c0_i32 = arith.constant 0 : i32
    %c0_i32_0 = arith.constant 0 : i32
    return %arg0, %arg1, %c0_i32 : i32, i32, i32
  }
  func.func @transform_1(%arg0: i32, %arg1: i32, %arg2: i32) -> (i32, i32, i32) {
    %c0_i32 = arith.constant 0 : i32
    %c0_i32_0 = arith.constant 0 : i32
    %c0_i32_1 = arith.constant 0 : i32
    return %arg0, %c0_i32, %c0_i32_0 : i32, i32, i32
  }
  func.func @transform_2(%arg0: i32, %arg1: i32, %arg2: i32) -> (i32, i32, i32) {
    %c0_i32 = arith.constant 0 : i32
    %c0_i32_0 = arith.constant 0 : i32
    %c0_i32_1 = arith.constant 0 : i32
    return %arg0, %c0_i32, %c0_i32_0 : i32, i32, i32
  }
  func.func @transform_3(%arg0: i32, %arg1: i32, %arg2: i32) -> (i32, i32) {
    %c0_i32 = arith.constant 0 : i32
    %c0_i32_0 = arith.constant 0 : i32
    return %c0_i32, %arg2 : i32, i32
  }
  func.func @transform_4(%arg0: i32, %arg1: i32, %arg2: i32) -> (i32, i32, i32) {
    %c0_i32 = arith.constant 0 : i32
    return %arg0, %arg1, %arg2 : i32, i32, i32
  }
}

</mosaic_0001>

<bundles_post_ra>
// kernel: tpu_custom_call.1
= control target key start
LH: loop header
LB: loop body
LE: loop exit
PB: predicated region body
PF: predicated region fallthrough
CT: control target
= control target key end

     0   :  { %9 = vsyncpa [#allocation4], 0  ;;  %s1070_s0 = inlined_call_operand.hbm [shape: f32[2,8,32], index: 0, kind: input, shape index: {}]   ;;  %s1071_s1 = inlined_call_operand.vmem [shape: f32[2,1,32], index: 1, kind: input, shape index: {}]   ;;  %s1072_s2 = inlined_call_operand.vmem [shape: f32[2,1,32], index: 2, kind: input, shape index: {}]   ;;  %s1073_s3 = inlined_call_operand.hbm [shape: f32[32,128], index: 3, kind: input, shape index: {}]   ;;  %s1074_s4 = inlined_call_operand.hbm [shape: f32[2,8,128], index: 4, kind: output, shape index: {}]  }
   0x1   :  { %11 = vsyncpa [#allocation4 + $0x1], 0 }
   0x2   :  { %12 = vsyncpa [#allocation7], 0 }
   0x3   :  { %13 = vsyncpa [#allocation5], 0 }
   0x4   :  { %15 = vsyncpa [#allocation5 + $0x1], 0  ;;  %s841_s15 = smov 0   ;;  %s843_s16 = smov 0  }
   0x5   :  { %s845_s17 = smov 0   ;;  %s847_s18 = smov 0  }
   0x6   :  { %s849_s19 = smov 0   ;;  %s851_s20 = smov 0  }
   0x7 LB: > { %s539_s21 = sadd.s32 4294967295, %s806_s20   ;;  %s540_s22 = sadd.s32 4294967294, %s806_s20   ;;  %s806_s20 = sphi %s851_s20, %s21_s20   ;;  %s802_s19 = sphi %s849_s19, %s1098_s19   ;;  %s798_s18 = sphi %s847_s18, %s1097_s18   ;;  %s794_s17 = sphi %s845_s17, %s1096_s17   ;;  %s790_s16 = sphi %s843_s16, %s1095_s16   ;;  %s786_s15 = sphi %s841_s15, %s1094_s15  }
   0x8   : > { %p62_p0 = scmp.ne.s32.totalorder %s790_s16, %s786_s15  ;;  %p875_p1 = scmp.eq.s32.totalorder %s539_s21, 0 }
   0x9   : > { %p879_p2 = scmp.eq.s32.totalorder %s539_s21, 1  ;;  %p174_p3 = scmp.eq.s32.totalorder %s540_s22, 1 }
   0xa   : > { %s1079_s23 = scalar_select %p875_p1, 1, 0 }
   0xb   : > { %s1080_s24 = scalar_select %p879_p2, 1, 0 }
   0xc   : > { %p885_p4 = por %p875_p1, %p62_p0  ;;  %p541_p5 = scmp.ge.s32.totalorder %s806_s20, 1 }
   0xd   : > { %p890_p6 = por %p174_p3, %p62_p0  ;;  %p181_p7 = scmp.lt.s32.totalorder %s806_s20, 3 }
   0xe   : > { %s1081_s25 = scalar_select %p885_p4, 1, 0 }
   0xf   : > { %s1082_s26 = scalar_select %p890_p6, 1, 0 }
  0x10   : > { %p895_p8 = pnand %p541_p5, %p181_p7  ;;  %s808_s28 = smov [#allocation6]  }
  0x11   : > { %s195_s29 = sshll.u32 %s808_s28, 4  ;;  %s40_s5 = sadd.s32 1, %s802_s19  ;;  %s196_s29 = int_to_ptr.vmem [resolvable:$true] %s195_s29 }
  0x12   : > { %s1083_s27 = scalar_select %p895_p8, 1, 0 }
  0x13   : > { %p586_p9 = pneg %p895_p8  ;;  %s662_s8 = scalar_lea.hbm %s1073_s3, 512 }
  0x14   : > { %p663_p12 = scmp.ne.s32.totalorder %s1073_s3, %s662_s8  ;;  %p669_p5 = scmp.lt.u32.totalorder %s662_s8, %s1073_s3 }
  0x15   : > { %p904_p11 = pnand %p586_p9, %p875_p1 }
  0x17   : > { %p664_p13 = pneg %p904_p11 }
  0x19   : > { %p665_p0 = pnand %p664_p13, %p663_p12 }
  0x1b   : > { %p666_p3 = pneg %p665_p0 }
  0x1d   : > { %p671_p7 = pnand %p669_p5, %p666_p3 }
  0x1f   : > { %674 = shalt.err (!%p671_p7)
}
  0x20   : > { %s675_s13 = scalar_lea.vmem %s196_s29, 512  ;;  %p683_p1 = scmp.lt.s32.totalorder %s196_s29, %s196_s29 }
  0x21   : > { %p676_p9 = scmp.ne.s32.totalorder %s196_s29, %s675_s13  ;;  %p684_p4 = scmp.lt.s32.totalorder %s675_s13, %s675_s13 }
  0x23   : > { %p678_p10 = pnand %p676_p9, %p664_p13  ;;  %p685_p8 = por %p684_p4, %p683_p1 }
  0x25   : > { %p679_p6 = pneg %p678_p10 }
  0x27   : > { %p686_p2 = pnand %p685_p8, %p679_p6 }
  0x29   : > { %689 = shalt.err (!%p686_p2)
}
  0x2a   : > { %s809_s14 = smov 128   ;;  %s810_s21 = smov 8  }
  0x2b   : > { %589 = dma.hbm_to_vmem [thread:$0]  (!%p904_p11), %s1073_s3, 512, %s196_s29, [#allocation7], %s809_s14, %s809_s14, %s810_s21  }
  0x2c   : > { %p42_p1 = scmp.ge.s32.totalorder %s40_s5, 2  ;;  %s49_s6 = sadd.s32 1, %s794_s17 }
  0x2d   : > { %p56_p2 = scmp.ne.s32.totalorder %s794_s17, %s790_s16  ;;  %p57_p4 = scmp.eq.s32.totalorder %s806_s20, 0 }
  0x2e   : > { %s1100_s5 = smov (%p42_p1, %s40_s5), 0  ;;  %p1086_p8 = scmp.ne.s32.totalorder %s1080_s24, 0 }
  0x2f   : > { %p931_p6 = por %p57_p4, %p56_p2  ;;  %s44_s30 = ssub.s32 %s802_s19, %s1100_s5 }
  0x30   : > { %p937_p10 = por %p1086_p8, %p56_p2  ;;  %p599_p12 = scmp.lt.s32.totalorder %s806_s20, 2 }
  0x31   : > { %p47_p11 = scmp.eq.s32.totalorder %s44_s30, 0  ;;  %s209_s29 = sand.u32 1, %s794_s17  }
  0x32   : > { %s544_s9 = sshll.u32 %s209_s29, 3  ;;  %s545_s11 = sshll.u32 %s802_s19, 7 }
  0x33   : > { %s946_s10 = scalar_select %p47_p11, %s794_s17, %s49_s6  }
  0x34   : > { %s952_s14 = scalar_lea.hbm %s1070_s0, %s545_s11  ;;  %s213_s24 = scalar_lea.vmem [#allocation3], %s544_s9 }
  0x35   : > { %s221_s21 = sshll.u32 %s213_s24, 4  ;;  %p958_p13 = pnand %p599_p12, %p931_p6  ;;  %s954_s21 = int_to_ptr.vmem [resolvable:$true] %s221_s21 }
  0x36   : > { %s210_s28 = scalar_lea.sflag [#allocation4], %s209_s29  ;;  %s690_s6 = scalar_lea.hbm %s952_s14, 128 }
  0x37   : > { %p691_p0 = scmp.ne.s32.totalorder %s952_s14, %s690_s6  ;;  %p692_p3 = pneg %p958_p13 }
  0x38   : > { %s695_s11 = scalar_lea.hbm %s1070_s0, 256  ;;  %p696_p9 = scmp.lt.u32.totalorder %s952_s14, %s1070_s0 }
  0x39   : > { %p693_p5 = pnand %p692_p3, %p691_p0  ;;  %p697_p1 = scmp.lt.u32.totalorder %s695_s11, %s690_s6 }
  0x3a   : > { %p699_p4 = scmp.lt.u32.totalorder %s690_s6, %s952_s14 }
  0x3b   : > { %p694_p7 = pneg %p693_p5  ;;  %p698_p2 = por %p697_p1, %p696_p9 }
  0x3d   : > { %p700_p6 = por %p699_p4, %p698_p2 }
  0x3f   : > { %p701_p8 = pnand %p700_p6, %p694_p7 }
  0x41   : > { %704 = shalt.err (!%p701_p8)
}
  0x42   : > { %s705_s29 = scalar_lea.vmem %s954_s21, 128  ;;  %s811_s13 = smov [#allocation3]  }
  0x43   : > { %p706_p12 = scmp.ne.s32.totalorder %s954_s21, %s705_s29  ;;  %s710_s24 = sshll.u32 %s811_s13, 4  ;;  %s711_s24 = int_to_ptr.vmem [resolvable:$false] %s710_s24 }
  0x44   : > { %s712_s30 = scalar_lea.vmem %s711_s24, 256  ;;  %p713_p5 = scmp.lt.s32.totalorder %s954_s21, %s711_s24 }
  0x45   : > { %p708_p11 = pnand %p706_p12, %p692_p3  ;;  %p714_p9 = scmp.lt.s32.totalorder %s712_s30, %s705_s29 }
  0x47   : > { %p709_p0 = pneg %p708_p11  ;;  %p715_p1 = por %p714_p9, %p713_p5 }
  0x49   : > { %p716_p2 = pnand %p715_p1, %p709_p0 }
  0x4b   : > { %719 = shalt.err (!%p716_p2)
}
  0x4c   : > { %593 = dma.hbm_to_vmem [thread:$0]  (!%p958_p13), %s952_s14, 128, %s954_s21, %s210_s28  }
  0x4d   : > { %p1089_p7 = scmp.ne.s32.totalorder %s1083_s27, 0 }
  0x4e   : > { %s990_s6 = sand.u32 (!%p1089_p7), 1, %s790_s16   ;;  %p1090_p3 = scmp.ne.s32.totalorder (!%p1089_p7), %s1081_s25, 0 }
  0x4f   : > { %242 = sbr.rel (%p1089_p7) target bundleno = 523 (0x20b), region = 36  ;;  %s547_s9 = sshll.u32 (!%p1089_p7), %s990_s6, 3 }
  0x50   : > { %s245_s11 = scalar_lea.sflag (!%p1089_p7), [#allocation4], %s990_s6  ;;  %s248_s7 = scalar_lea.vmem (!%p1089_p7), [#allocation3], %s547_s9 }
  0x56   : > { %773 = dma.done.wait (%p1090_p3), %s245_s11, 128  }
  0x57   : > { %775 = vsyncadd (%p1090_p3), %s245_s11, 4294967168  ;;  %p1091_p13 = scmp.ne.s32.totalorder %s1079_s23, 0 }
  0x59   : > { %777 = dma.done.wait (%p1091_p13), [#allocation7], 512  }
  0x5a   : > { %779 = vsyncadd (%p1091_p13), [#allocation7], 4294966784  ;;  %v293_v0 = vld [vmem:[%s248_s7] sm:$0xff]  ;;  %vm297_vm0 = vcmask 261120   ;;  %v323_v3 = vld [vmem:[#allocation6] sm:$0xff]  ;;  %v812_v6 = vmov 0.0|0.0   ;;  %v308_v13 = vlaneseq }
  0x5b   : > { %v296_v1 = vmul.f32 %v293_v0, %v293_v0  ;;  %v324_v4 = vld [vmem:[#allocation6 + $0x8] sm:$0xff]  ;;  %572 = vmatprep.subr.bf16.mxu0 %v812_v6  ;;  %v325_v7 = vld [vmem:[#allocation6 + $0x10] sm:$0xff]  ;;  %v326_v8 = vld [vmem:[#allocation6 + $0x18] sm:$0xff]  ;;  %vm813_vm1 = vmmov 0   ;;  %v814_v10 = vmov 0.0   ;;  %p283_p4 = scmp.lt.s32.totalorder %s798_s18, 1 }
  0x5c   : > { %v573_v5 = vpack.c.bf16 %v324_v4, %v323_v3  ;;  %v576_v9 = vpack.c.bf16 %v326_v8, %v325_v7  ;;  %569 = vmatprep.mubr.msk.f32.mxu0 %vm813_vm1, %v814_v10  ;;  %v309_v15 = vshrl.u32 %v308_v13, 7  ;;  %s553_s12 = sshll.u32 %s798_s18, 7  ;;  %s282_s29 = scalar_lea.vmem [#allocation8], %s547_s9 }
  0x5d   : > { %v298_v2 = vsel %vm297_vm0, %v296_v1, 0.0  ;;  %s284_s23 = scalar_select %p283_p4, %s798_s18, 1 }
  0x5e   : > { %299 = vadd.xlane.f32.xlu0 %v298_v2  ;;  %574 = vmatpush3.bf16.msra.mxu0 %v573_v5  ;;  %v310_v18 = vsub.s32 0, %v309_v15  ;;  %s425_s13 = sshll.u32 %s282_s29, 4  ;;  %s1021_s11 = scalar_lea.hbm %s1074_s4, %s553_s12  ;;  %s1023_s13 = int_to_ptr.vmem [resolvable:$true] %s425_s13 }
  0x5f   : > { %575 = vmatprep.subr.bf16.mxu0 %v812_v6  ;;  %s288_s14 = scalar_lea.vmem %s1072_s2, %s284_s23  ;;  %s285_s28 = scalar_lea.vmem %s1071_s1, %s284_s23 }
  0x60   : > { %v295_v16 = vld [vmem:[%s288_s14] sm:$0x1]  ;;  %s410_s7 = scalar_lea.sflag [#allocation5], %s990_s6  ;;  %s720_s23 = scalar_lea.vmem %s1023_s13, 128 }
  0x61   : > { %v306_v17 = vadd.f32 1.0, %v295_v16  ;;  %v550_v22 = vld [vmem:[%s285_s28] ss:$0 sm:$0xff]  ;;  %p721_p6 = scmp.ne.s32.totalorder %s1023_s13, %s720_s23  ;;  %s815_s18 = smov [#allocation8]  }
  0x62   : > { %577 = vmatpush3.bf16.msra.mxu0 %v576_v9  ;;  %s724_s9 = sshll.u32 %s815_s18, 4  ;;  %s725_s9 = int_to_ptr.vmem [resolvable:$false] %s724_s9 }
  0x63   : > { %v311_v19 = vrot.slane %v306_v17, %v310_v18  ;;  %p722_p8 = pnand %p721_p6, %p937_p10  ;;  %s726_s25 = scalar_lea.vmem %s725_s9, 256 }
  0x64   : > { %p727_p11 = scmp.lt.s32.totalorder %s1023_s13, %s725_s9  ;;  %p728_p0 = scmp.lt.s32.totalorder %s726_s25, %s720_s23 }
  0x65   : > { %p723_p12 = pneg %p722_p8 }
  0x66   : > { %p729_p5 = por %p728_p0, %p727_p11 }
  0x68   : > { %p730_p9 = pnand %p729_p5, %p723_p12 }
  0xeb   : > { %v300_v11 = vpop.xlane.xlu0 %299 }
  0xec   : > { %v302_v12 = vmul.f32 0.03125, %v300_v11 }
  0xee   : > { %v303_v14 = vadd.f32 1.1920929e-07, %v302_v12 }
  0xf0   : > { %656 = vrsqrt.f32 %v303_v14 }
  0xfa   : > { %v657_v20 = vpop.eup %656 }
  0xfb   : > { %v305_v21 = vmul.f32 %v657_v20, %v293_v0 }
  0xfd   : > { %v313_v23 = vmul.f32 %v311_v19, %v305_v21 }
  0xff   : > { %v320_v24 = vadd.f32 %v550_v22, %v313_v23 }
 0x101   : > { %321 = vst.msk [vmem:[#allocation2] sm:$0xff] %vm297_vm0, %v320_v24 }
 0x108   : > { %v322_v25 = vld [vmem:[#allocation2] sm:$0xff] }
 0x109   : > { %570 = vmatmul.mubr.msk.f32.vlgmr.msra.gmra.mrb[0].mxu0 %vm297_vm0, %v322_v25 }
 0x1dc   : > { %v397_v26 = vpop.f32.mrb[0].mxu0 }
 0x1dd   : > { %v401_v27 = vmul.f32 0.023570227, %v397_v26  ;;  %v571_v28 = vpop.f32.mrb[1].mxu0 }
 0x1df   : > { %v402_v29 = vsub.f32 0.0, %v401_v27 }
 0x1e1   : > { %v403_v30 = vmul.f32 1.442695, %v402_v29 }
 0x1e3   : > { %658 = vpow2.f32 %v403_v30 }
 0x1ed   : > { %v659_v31 = vpop.eup %658 }
 0x1ee   : > { %v405_v32 = vadd.f32 1.0, %v659_v31 }
 0x1f0   : > { %660 = vrcp.f32 %v405_v32 }
 0x1fa   : > { %v661_v33 = vpop.eup %660 }
 0x1fb   : > { %v407_v34 = vmul.f32 30.0, %v661_v33 }
 0x1fd   : > { %408 = vst [vmem:[%s282_s29] sm:$0xff] %v407_v34 }
 0x1fe   : > { %733 = shalt.err (!%p730_p9)
}
 0x1ff   : > { %s734_s6 = scalar_lea.hbm %s1021_s11, 128  ;;  %s738_s21 = scalar_lea.hbm %s1074_s4, 256 }
 0x200   : > { %p735_p1 = scmp.ne.s32.totalorder %s1021_s11, %s734_s6  ;;  %p739_p3 = scmp.lt.u32.totalorder %s1021_s11, %s1074_s4 }
 0x201   : > { %p740_p13 = scmp.lt.u32.totalorder %s738_s21, %s734_s6  ;;  %p742_p6 = scmp.lt.u32.totalorder %s734_s6, %s1021_s11 }
 0x202   : > { %p736_p2 = pnand %p735_p1, %p937_p10 }
 0x203   : > { %p741_p4 = por %p740_p13, %p739_p3 }
 0x204   : > { %p737_p7 = pneg %p736_p2 }
 0x205   : > { %p743_p8 = por %p742_p6, %p741_p4 }
 0x207   : > { %p744_p12 = pnand %p743_p8, %p737_p7 }
 0x209   : > { %747 = shalt.err (!%p744_p12)
}
 0x20a   : > { %584 = dma.vmem_to_hbm [thread:$0]  (%p937_p10), %s1023_s13, 128, %s1021_s11, %s410_s7  }
 0x20b PF: > { %s437_s12 = sand.u32 1, %s786_s15   ;;  %p1092_p11 = scmp.ne.s32.totalorder %s1082_s26, 0 }
 0x20c   : > { %p1093_p0 = scmp.ge.s32.totalorder %s806_s20, 2  ;;  %s438_s29 = scalar_lea.sflag [#allocation5], %s437_s12 }
 0x20e   : > { %p595_p5 = pnand %p1093_p0, %p1092_p11 }
 0x210   : > { %781 = dma.done.wait (!%p595_p5), %s438_s29, 128  }
 0x211   : > { %783 = vsyncadd (!%p595_p5), %s438_s29, 4294967168  ;;  %s21_s20 = sadd.s32 1, %s806_s20   ;;  %s1094_s15 = smov %s790_s16 }
 0x212   : > { %p18_p9 = scmp.ge.s32.totalorder %s21_s20, 4   ;;  %s1095_s16 = smov %s794_s17 }
 0x213   : > { %s1096_s17 = smov %s946_s10  ;;  %s1097_s18 = smov %s802_s19 }
 0x214   : > { %s1098_s19 = smov %s1100_s5  ;;  %20 = sbr.rel (!%p18_p9) target bundleno = 7 (0x7), region = 96 }
 0x21b   :  { %443 = vsyncpa [#allocation4], 1 }
 0x21c   :  { %445 = vsyncpa [#allocation4 + $0x1], 1 }
 0x21d   :  { %446 = vsyncpa [#allocation7], 1 }
 0x21e   :  { %447 = vsyncpa [#allocation5], 1 }
 0x21f   :  { %449 = vsyncpa [#allocation5 + $0x1], 1 }

</bundles_post_ra>
